<compile_context>
chip_gen: v6e
topology: v6e:2x2x1
jax: 0.10.0
libtpu: 0.0.40
codegen_flags: <defaults>
</compile_context>

<pallas_src>
import functools

import jax
import jax.numpy as jnp
from jax.experimental import pallas as pl
from jax.experimental.pallas import tpu as pltpu


def _round_up(x, m):
    return ((x + m - 1) // m) * m


def resnet_head_kernel(x_ref, w1_ref, b1_ref, w2_ref, b2_ref, o_ref, *, inv_hw):
    # x_ref: (TB, C, HW) -- native NCHW with flattened spatial, HW on the lane
    # axis.  Encoder stand-in: global average pool over the spatial (lane)
    # axis, accumulated in f32 regardless of x's streaming dtype.
    feats = jnp.sum(x_ref[...], axis=-1, dtype=jnp.float32) * inv_hw   # (TB, C)

    # head: Linear(n_feats, n_hidden) + ReLU   (output width padded to 128)
    z = jnp.dot(feats, w1_ref[...], preferred_element_type=jnp.float32)
    z = jnp.maximum(z + b1_ref[...], 0.0)                              # (TB, Hp)

    # clf: Linear(n_hidden, n_classes)
    y = jnp.dot(z, w2_ref[...], preferred_element_type=jnp.float32)
    o_ref[...] = (y + b2_ref[...]).astype(o_ref.dtype)                 # (TB, Np)


def _vmem_capacity_bytes():
    """Per-TensorCore VMEM; fall back to the smallest (v7x, 64 MiB) if unknown."""
    try:
        return int(pltpu.get_tpu_info().vmem_capacity_bytes)
    except Exception:
        return 64 * 1024 * 1024


def _pick_batch_tile(batch, c, hw, hp, np_, x_itemsize, budget_bytes, tb_cap):
    """Largest batch tile (multiple of 8, <= tb_cap) such that
    2x the x block + 2x the out block + the single-buffered resident
    weights/biases fit inside budget_bytes."""
    resident = (c * hp + hp + hp * np_ + np_) * 4          # weights + biases (f32)
    per_row = 2 * (c * hw * x_itemsize) + 2 * (np_ * 4)    # dbl-buffered x + out
    avail = max(budget_bytes - resident, per_row * 8)
    tb = avail // per_row
    tb = max(8, min(tb_cap, (tb // 8) * 8))

    pB8 = _round_up(batch, 8)
    tb = min(tb, pB8)                       # don't over-pad tiny batches
    if pB8 >= 16:
        # Keep >= 2 grid steps so v7x's second TensorCore has work.
        tb = min(tb, max(8, ((pB8 // 2) // 8) * 8))
    return tb


def resnet_head_forward(x_nchw, w1, b1, w2, b2, *, stream_bf16=False):
    """x_nchw: (B, C, H, W).  w1: (n_hidden, n_feats), w2: (n_classes, n_hidden)
    in PyTorch (out, in) layout; biases 1-D.  Returns (B, n_classes) f32."""
    B, C, H, W = x_nchw.shape
    n_hidden, n_feats = w1.shape
    n_classes = w2.shape[0]
    assert n_feats == C, "encoder (global avg pool) produces n_feats == C features"
    HW = H * W

    # Only matmul output widths are padded (lane-dense MXU results / stores).
    Hp = _round_up(n_hidden, 128)
    Np = _round_up(n_classes, 128)

    x_dtype = jnp.bfloat16 if stream_bf16 else x_nchw.dtype
    x_itemsize = jnp.dtype(x_dtype).itemsize

    vmem_cap = _vmem_capacity_bytes()
    if vmem_cap >= 100 * 1024 * 1024:       # v5e / v6e: 128 MiB per TensorCore
        budget, tb_cap = 56 * 1024 * 1024, 512
    else:                                   # v7x: 64 MiB per TensorCore
        budget, tb_cap = 40 * 1024 * 1024, 128

    TB = _pick_batch_tile(B, C, HW, Hp, Np, x_itemsize, budget, tb_cap)
    pB = _round_up(B, TB)

    # (B, C, H, W) -> (B, C, HW): a pure reshape, no transpose / extra HBM pass.
    x3 = x_nchw.reshape(B, C, HW)
    if stream_bf16:
        x3 = x3.astype(jnp.bfloat16)
    if pB != B:
        x3 = jnp.pad(x3, ((0, pB - B), (0, 0), (0, 0)))

    # Weights to (in, out) layout; zero-pad only the output dims (math exact).
    w1_t = jnp.pad(jnp.transpose(w1), ((0, 0), (0, Hp - n_hidden)))          # (C, Hp)
    w2_t = jnp.pad(jnp.transpose(w2), ((0, Hp - n_hidden), (0, Np - n_classes)))
    b1_2d = jnp.pad(b1.reshape(1, n_hidden), ((0, 0), (0, Hp - n_hidden)))
    b2_2d = jnp.pad(b2.reshape(1, n_classes), ((0, 0), (0, Np - n_classes)))

    # Actual VMEM footprint: double-buffered x/out blocks + resident weights.
    x_block_bytes = TB * C * HW * x_itemsize
    out_block_bytes = TB * Np * 4
    resident_bytes = (C * Hp + Hp + Hp * Np + Np) * 4
    vmem_usage = 2 * x_block_bytes + 2 * out_block_bytes + resident_bytes
    vmem_limit = int(min(vmem_cap, vmem_usage + 8 * 1024 * 1024))

    grid = (pB // TB,)
    kernel = functools.partial(resnet_head_kernel, inv_hw=1.0 / float(HW))

    cost = pl.CostEstimate(
        flops=2 * pB * (C * Hp + Hp * Np) + pB * C * HW,
        transcendentals=0,
        bytes_accessed=(pB * C * HW * x_itemsize
                        + (w1_t.size + w2_t.size + b1_2d.size + b2_2d.size) * 4
                        + pB * Np * 4),
    )

    def _resident(shape):
        # Constant index_map -> fetched once; single-buffer to save VMEM.
        return pl.BlockSpec(shape, lambda i: (0, 0), pipeline_mode=pl.Buffered(1))

    out_padded = pl.pallas_call(
        kernel,
        out_shape=jax.ShapeDtypeStruct((pB, Np), jnp.float32),
        grid=grid,
        in_specs=[
            pl.BlockSpec((TB, C, HW), lambda i: (i, 0, 0)),  # x: batch-tiled, native layout
            _resident((C, Hp)),      # w1 (in, out)
            _resident((1, Hp)),      # b1
            _resident((Hp, Np)),     # w2 (in, out)
            _resident((1, Np)),      # b2
        ],
        out_specs=pl.BlockSpec((TB, Np), lambda i: (i, 0)),
        compiler_params=pltpu.CompilerParams(
            dimension_semantics=("parallel",),
            vmem_limit_bytes=vmem_limit,
        ),
        cost_estimate=cost,
    )(x3, w1_t, b1_2d, w2_t, b2_2d)

    # Padded batch rows / class columns are dropped here.
    return out_padded[:B, :n_classes]


if __name__ == "__main__":
    # Small shapes consistent with the module's forward.
    B, C, H, W = 2, 4, 16, 16          # n_feats == C == 4
    n_feats, n_hidden, n_classes = C, 32, 8

    key = jax.random.PRNGKey(0)
    kx, kw1, kb1, kw2, kb2 = jax.random.split(key, 5)

    x = jax.random.normal(kx, (B, C, H, W), dtype=jnp.float32)

    # Deterministic PyTorch-style Linear init: U(-1/sqrt(fan_in), 1/sqrt(fan_in)).
    lim1 = 1.0 / jnp.sqrt(jnp.float32(n_feats))
    lim2 = 1.0 / jnp.sqrt(jnp.float32(n_hidden))
    w1 = jax.random.uniform(kw1, (n_hidden, n_feats), jnp.float32, -lim1, lim1)
    b1 = jax.random.uniform(kb1, (n_hidden,), jnp.float32, -lim1, lim1)
    w2 = jax.random.uniform(kw2, (n_classes, n_hidden), jnp.float32, -lim2, lim2)
    b2 = jax.random.uniform(kb2, (n_classes,), jnp.float32, -lim2, lim2)

    out = resnet_head_forward(x, w1, b1, w2, b2)
    out = jax.block_until_ready(out)

    # Pure-JAX reference check (encoder stand-in + head + clf).
    feats = jnp.mean(x.reshape(B, C, H * W), axis=-1)
    ref = jnp.maximum(feats @ w1.T + b1, 0.0) @ w2.T + b2
    assert out.shape == (B, n_classes)
    assert jnp.allclose(out, ref, atol=1e-5, rtol=1e-5)

    print("KERNEL_OK")
</pallas_src>

<mosaic_0001>
module attributes {stable_mosaic.version = 11 : i64} {
  func.func @resnet_head_kernel(%arg0: i32, %arg1: memref<8x4x256xf32, #tpu.memory_space<vmem>>, %arg2: memref<4x128xf32, #tpu.memory_space<vmem>>, %arg3: memref<1x128xf32, #tpu.memory_space<vmem>>, %arg4: memref<128x128xf32, #tpu.memory_space<vmem>>, %arg5: memref<1x128xf32, #tpu.memory_space<vmem>>, %arg6: memref<8x128xf32, #tpu.memory_space<vmem>>) attributes {dimension_semantics = [#tpu.dimension_semantics<parallel>], iteration_bounds = array<i64: 1>, scalar_prefetch = 0 : i64, scratch_operands = 0 : i64, tpu.core_type = #tpu.core_type<tc>, window_params = [{transform_indices = @transform_0, window_bounds = array<i64: 8, 4, 256>}, {pipeline_mode = #tpu.pipeline_mode<synchronous>, transform_indices = @transform_1, window_bounds = array<i64: 4, 128>}, {pipeline_mode = #tpu.pipeline_mode<synchronous>, transform_indices = @transform_2, window_bounds = array<i64: 1, 128>}, {pipeline_mode = #tpu.pipeline_mode<synchronous>, transform_indices = @transform_3, window_bounds = array<i64: 128, 128>}, {pipeline_mode = #tpu.pipeline_mode<synchronous>, transform_indices = @transform_4, window_bounds = array<i64: 1, 128>}, {transform_indices = @transform_5, window_bounds = array<i64: 8, 128>}]} {
    %c0 = arith.constant 0 : index
    %c0_0 = arith.constant 0 : index
    %c0_1 = arith.constant 0 : index
    %0 = vector.load %arg1[%c0, %c0_0, %c0_1] : memref<8x4x256xf32, #tpu.memory_space<vmem>>, vector<8x4x256xf32>
    %cst = arith.constant dense<0.000000e+00> : vector<8x4xf32>
    %1 = vector.multi_reduction <add>, %0, %cst [2] : vector<8x4x256xf32> to vector<8x4xf32>
    %cst_2 = arith.constant 3.906250e-03 : f32
    %2 = vector.broadcast %cst_2 : f32 to vector<8x4xf32>
    %3 = arith.mulf %1, %2 : vector<8x4xf32>
    %c0_3 = arith.constant 0 : index
    %c0_4 = arith.constant 0 : index
    %4 = vector.load %arg2[%c0_3, %c0_4] : memref<4x128xf32, #tpu.memory_space<vmem>>, vector<4x128xf32>
    %cst_5 = arith.constant dense<0.000000e+00> : vector<8x128xf32>
    %5 = tpu.matmul %3, %4, %cst_5 {dimension_numbers = #tpu.dot_dimension_numbers<[1], [0], [0], [1], [0, 0, 1, 1], [], []>} : vector<8x4xf32>, vector<4x128xf32>, vector<8x128xf32> -> vector<8x128xf32>
    %c0_6 = arith.constant 0 : index
    %c0_7 = arith.constant 0 : index
    %6 = vector.load %arg3[%c0_6, %c0_7] : memref<1x128xf32, #tpu.memory_space<vmem>>, vector<1x128xf32>
    %7 = vector.broadcast %6 : vector<1x128xf32> to vector<8x128xf32>
    %8 = arith.addf %5, %7 : vector<8x128xf32>
    %cst_8 = arith.constant 0.000000e+00 : f32
    %9 = vector.broadcast %cst_8 : f32 to vector<8x128xf32>
    %10 = arith.maximumf %8, %9 : vector<8x128xf32>
    %c0_9 = arith.constant 0 : index
    %c0_10 = arith.constant 0 : index
    %11 = vector.load %arg4[%c0_9, %c0_10] : memref<128x128xf32, #tpu.memory_space<vmem>>, vector<128x128xf32>
    %cst_11 = arith.constant dense<0.000000e+00> : vector<8x128xf32>
    %12 = tpu.matmul %10, %11, %cst_11 {dimension_numbers = #tpu.dot_dimension_numbers<[1], [0], [0], [1], [0, 0, 1, 1], [], []>} : vector<8x128xf32>, vector<128x128xf32>, vector<8x128xf32> -> vector<8x128xf32>
    %c0_12 = arith.constant 0 : index
    %c0_13 = arith.constant 0 : index
    %13 = vector.load %arg5[%c0_12, %c0_13] : memref<1x128xf32, #tpu.memory_space<vmem>>, vector<1x128xf32>
    %14 = vector.broadcast %13 : vector<1x128xf32> to vector<8x128xf32>
    %15 = arith.addf %12, %14 : vector<8x128xf32>
    %c0_14 = arith.constant 0 : index
    %c0_15 = arith.constant 0 : index
    %16 = vector.load %arg6[%c0_14, %c0_15] : memref<8x128xf32, #tpu.memory_space<vmem>>, vector<8x128xf32>
    tpu.vector_store %arg6[%c0_14, %c0_15], %15 {strides = array<i32>} : memref<8x128xf32, #tpu.memory_space<vmem>>, vector<8x128xf32>,
    return
  }
  func.func @transform_0(%arg0: i32) -> (i32, i32, i32) {
    %c0_i32 = arith.constant 0 : i32
    %c0_i32_0 = arith.constant 0 : i32
    %c0_i32_1 = arith.constant 0 : i32
    return %arg0, %c0_i32, %c0_i32_0 : i32, i32, i32
  }
  func.func @transform_1(%arg0: i32) -> (i32, i32) {
    %c0_i32 = arith.constant 0 : i32
    %c0_i32_0 = arith.constant 0 : i32
    %c0_i32_1 = arith.constant 0 : i32
    return %c0_i32, %c0_i32_0 : i32, i32
  }
  func.func @transform_2(%arg0: i32) -> (i32, i32) {
    %c0_i32 = arith.constant 0 : i32
    %c0_i32_0 = arith.constant 0 : i32
    %c0_i32_1 = arith.constant 0 : i32
    return %c0_i32, %c0_i32_0 : i32, i32
  }
  func.func @transform_3(%arg0: i32) -> (i32, i32) {
    %c0_i32 = arith.constant 0 : i32
    %c0_i32_0 = arith.constant 0 : i32
    %c0_i32_1 = arith.constant 0 : i32
    return %c0_i32, %c0_i32_0 : i32, i32
  }
  func.func @transform_4(%arg0: i32) -> (i32, i32) {
    %c0_i32 = arith.constant 0 : i32
    %c0_i32_0 = arith.constant 0 : i32
    %c0_i32_1 = arith.constant 0 : i32
    return %c0_i32, %c0_i32_0 : i32, i32
  }
  func.func @transform_5(%arg0: i32) -> (i32, i32) {
    %c0_i32 = arith.constant 0 : i32
    %c0_i32_0 = arith.constant 0 : i32
    return %arg0, %c0_i32 : i32, i32
  }
}

</mosaic_0001>

<bundles_post_ra>
// kernel: tpu_custom_call.1
= control target key start
LH: loop header
LB: loop body
LE: loop exit
PB: predicated region body
PF: predicated region fallthrough
CT: control target
= control target key end

     0   :  { %10 = vsyncpa [#allocation3], 0  ;;  %s649_s0 = inlined_call_operand.hbm [shape: f32[8,4,256], index: 0, kind: input, shape index: {}]   ;;  %s650_s1 = inlined_call_operand.hbm [shape: f32[4,128], index: 1, kind: input, shape index: {}]   ;;  %s651_s2 = inlined_call_operand.vmem [shape: f32[1,128], index: 2, kind: input, shape index: {}]   ;;  %s652_s3 = inlined_call_operand.hbm [shape: f32[128,128], index: 3, kind: input, shape index: {}]   ;;  %s653_s4 = inlined_call_operand.vmem [shape: f32[1,128], index: 4, kind: input, shape index: {}]   ;;  %s654_s5 = inlined_call_operand.hbm [shape: f32[8,128], index: 5, kind: output, shape index: {}]  }
   0x1   :  { %11 = vsyncpa [#allocation6], 0 }
   0x2   :  { %12 = vsyncpa [#allocation4], 0  ;;  %s557_s18 = smov [#allocation5]   ;;  %s558_s20 = smov [#allocation2]  }
   0x3   :  { %s31_s19 = sshll.u32 %s557_s18, 4  ;;  %s18_s21 = sshll.u32 %s558_s20, 4  ;;  %s32_s19 = int_to_ptr.vmem [resolvable:$true] %s31_s19  ;;  %s19_s21 = int_to_ptr.vmem [resolvable:$true] %s18_s21 }
   0x4   :  { %s479_s22 = scalar_lea.vmem %s32_s19, 64  ;;  %p484_p1 = scmp.lt.s32.totalorder %s32_s19, %s32_s19 }
   0x5   :  { %p480_p0 = scmp.ne.s32.totalorder %s32_s19, %s479_s22  ;;  %p485_p2 = scmp.lt.s32.totalorder %s479_s22, %s479_s22 }
   0x7   :  { %p486_p3 = por %p485_p2, %p484_p1 }
   0x9   :  { %p487_p4 = pnand %p486_p3, %p480_p0 }
   0xb   :  { %490 = shalt.err (!%p487_p4)
}
   0xc   :  { %34 = dma.hbm_to_vmem [thread:$0]  %s650_s1, 64, %s32_s19, [#allocation6]  }
   0xd   :  { %s499_s25 = scalar_lea.vmem %s19_s21, 1024  ;;  %p504_p6 = scmp.lt.s32.totalorder %s19_s21, %s19_s21 }
   0xe   :  { %p500_p5 = scmp.ne.s32.totalorder %s19_s21, %s499_s25  ;;  %p505_p7 = scmp.lt.s32.totalorder %s499_s25, %s499_s25 }
  0x10   :  { %p506_p8 = por %p505_p7, %p504_p6 }
  0x12   :  { %p507_p9 = pnand %p506_p8, %p500_p5 }
  0x14   :  { %510 = shalt.err (!%p507_p9)
}
  0x15   :  { %s559_s26 = smov 128   ;;  %s560_s27 = smov 8  }
  0x16   :  { %24 = dma.hbm_to_vmem [thread:$0]  %s649_s0, 1024, %s19_s21, [#allocation3], %s559_s26, %s559_s26, %s560_s27  }
  0x17   :  { %s561_s30 = smov [#allocation7]  }
  0x18   :  { %s42_s6 = sshll.u32 %s561_s30, 4  ;;  %s43_s6 = int_to_ptr.vmem [resolvable:$true] %s42_s6 }
  0x19   :  { %s519_s7 = scalar_lea.vmem %s43_s6, 2048  ;;  %p524_p11 = scmp.lt.s32.totalorder %s43_s6, %s43_s6 }
  0x1a   :  { %p520_p10 = scmp.ne.s32.totalorder %s43_s6, %s519_s7  ;;  %p525_p12 = scmp.lt.s32.totalorder %s519_s7, %s519_s7 }
  0x1c   :  { %p526_p13 = por %p525_p12, %p524_p11 }
  0x1e   :  { %p527_p0 = pnand %p526_p13, %p520_p10 }
  0x20   :  { %530 = shalt.err (!%p527_p0)
}
  0x21   :  { %48 = dma.hbm_to_vmem [thread:$0]  %s652_s3, 2048, %s43_s6, [#allocation6], %s559_s26, %s559_s26, %s560_s27  }
  0x22   :  { %551 = dma.done.wait [#allocation3], 1024  }
  0x23   :  { %552 = vsyncadd [#allocation3], 4294966272 }
  0x24   :  { %553 = dma.done.wait [#allocation6], 2112  }
  0x25   :  { %554 = vsyncadd [#allocation6], 4294965184  ;;  %vm92_vm0 = vcmask 1043456   ;;  %v60_v0 = vld [vmem:[#allocation2] sm:$0xff]  ;;  %v62_v1 = vld [vmem:[#allocation2 + $0x10] sm:$0xff]  ;;  %v562_v41 = vmov 0.0   ;;  %v157_v55 = vlaneseq }
  0x26   :  { %v61_v2 = vld [vmem:[#allocation2 + $0x8] sm:$0xff]  ;;  %v76_v3 = vcombine.high %v60_v0, %v60_v0  ;;  %v93_v4 = vsel %vm92_vm0, %v60_v0, 0.0  ;;  %v78_v5 = vcombine.high %v62_v1, %v62_v1  ;;  %v103_v6 = vsel %vm92_vm0, %v62_v1, 0.0  ;;  %v63_v7 = vld [vmem:[#allocation2 + $0x18] sm:$0xff]  ;;  %v64_v8 = vld [vmem:[#allocation2 + $0x20] sm:$0xff]  ;;  %415 = vmatprep.subr.mxu0 %v562_v41  ;;  %420 = vmatprep.subr.mxu1 %v562_v41  ;;  %s564_s11 = smov [#allocation8]  }
  0x27   :  { %v77_v9 = vcombine.high %v61_v2, %v61_v2  ;;  %v98_v10 = vsel %vm92_vm0, %v61_v2, 0.0  ;;  %v79_v11 = vcombine.high %v63_v7, %v63_v7  ;;  %v65_v12 = vld [vmem:[#allocation2 + $0x28] sm:$0xff]  ;;  %v108_v15 = vsel %vm92_vm0, %v63_v7, 0.0  ;;  %v66_v21 = vld [vmem:[#allocation2 + $0x30] sm:$0xff]  ;;  %v67_v22 = vld [vmem:[#allocation2 + $0x38] sm:$0xff]  ;;  %s382_s12 = sshll.u32 %s564_s11, 4  ;;  %s383_s12 = int_to_ptr.vmem [resolvable:$true] %s382_s12 }
  0x28   :  { %v94_v13 = vsel %vm92_vm0, %v76_v3, 0.0  ;;  %v104_v14 = vsel %vm92_vm0, %v78_v5, 0.0  ;;  %v80_v16 = vcombine.high %v64_v8, %v64_v8  ;;  %v81_v23 = vcombine.high %v65_v12, %v65_v12  ;;  %v141_v40 = vld [vmem:[#allocation5] sm:$0xf]  ;;  %v296_v43 = vld [vmem:[#allocation7 + $0x70] sm:$0xff]  ;;  %v295_v44 = vld [vmem:[#allocation7 + $0x68] sm:$0xff]  ;;  %p536_p2 = scmp.lt.s32.totalorder %s383_s12, %s383_s12 }
  0x29   :  { %v95_v17 = vadd.f32 %v94_v13, %v93_v4  ;;  %v105_v18 = vadd.f32 %v104_v14, %v103_v6  ;;  %v99_v19 = vsel %vm92_vm0, %v77_v9, 0.0  ;;  %v109_v20 = vsel %vm92_vm0, %v79_v11, 0.0  ;;  %416 = vmatpush3.msk.msra.mxu0 %vm92_vm0, %v141_v40  ;;  %v297_v42 = vld [vmem:[#allocation7 + $0x78] sm:$0xff]  ;;  %v294_v45 = vld [vmem:[#allocation7 + $0x60] sm:$0xff]  ;;  %v292_v47 = vld [vmem:[#allocation7 + $0x50] sm:$0xff]  ;;  %s531_s13 = scalar_lea.vmem %s383_s12, 128 }
  0x2a   :  { %v100_v24 = vadd.f32 %v99_v19, %v98_v10  ;;  %v110_v25 = vadd.f32 %v109_v20, %v108_v15  ;;  %v113_v26 = vsel %vm92_vm0, %v64_v8, 0.0  ;;  %v114_v27 = vsel %vm92_vm0, %v80_v16, 0.0  ;;  %421 = vmatpush3.msra.mxu1 %v297_v42  ;;  %v293_v46 = vld [vmem:[#allocation7 + $0x58] sm:$0xff]  ;;  %v291_v48 = vld [vmem:[#allocation7 + $0x48] sm:$0xff]  ;;  %v290_v49 = vld [vmem:[#allocation7 + $0x40] sm:$0xff]  ;;  %p532_p1 = scmp.ne.s32.totalorder %s383_s12, %s531_s13  ;;  %p537_p3 = scmp.lt.s32.totalorder %s531_s13, %s531_s13 }
  0x2b   :  { %96 = vadd.xlane.f32.xlu0 %v95_v17  ;;  %106 = vadd.xlane.f32.xlu1 %v105_v18  ;;  %v118_v28 = vsel %vm92_vm0, %v65_v12, 0.0  ;;  %v119_v29 = vsel %vm92_vm0, %v81_v23, 0.0  ;;  %v82_v30 = vcombine.high %v66_v21, %v66_v21  ;;  %v83_v31 = vcombine.high %v67_v22, %v67_v22  ;;  %v289_v50 = vld [vmem:[#allocation7 + $0x38] sm:$0xff]  ;;  %v288_v51 = vld [vmem:[#allocation7 + $0x30] sm:$0xff]  ;;  %v287_v52 = vld [vmem:[#allocation7 + $0x28] sm:$0xff] }
  0x2c   :  { %v115_v32 = vadd.f32 %v114_v27, %v113_v26  ;;  %v120_v33 = vadd.f32 %v119_v29, %v118_v28  ;;  %v123_v34 = vsel %vm92_vm0, %v66_v21, 0.0  ;;  %v128_v36 = vsel %vm92_vm0, %v67_v22, 0.0  ;;  %422 = vmatprep.subr.mxu1 %v562_v41  ;;  %v286_v53 = vld [vmem:[#allocation7 + $0x20] sm:$0xff]  ;;  %v285_v54 = vld [vmem:[#allocation7 + $0x18] sm:$0xff]  ;;  %v284_v26 = vld [vmem:[#allocation7 + $0x10] sm:$0xff]  ;;  %p538_p4 = por %p537_p3, %p536_p2 }
  0x2d   :  { %v124_v35 = vsel %vm92_vm0, %v82_v30, 0.0  ;;  %v129_v37 = vsel %vm92_vm0, %v83_v31, 0.0  ;;  %vm563_vm1 = vmmov 0   ;;  %423 = vmatpush3.msra.mxu1 %v296_v43  ;;  %v158_v56 = vand.u32 127, %v157_v55  ;;  %v283_v27 = vld [vmem:[#allocation7 + $0x8] sm:$0xff]  ;;  %v282_v28 = vld [vmem:[#allocation7] sm:$0xff] }
  0x2e   :  { %v125_v38 = vadd.f32 %v124_v35, %v123_v34  ;;  %v130_v39 = vadd.f32 %v129_v37, %v128_v36  ;;  %417 = vmatprep.mubr.msk.f32.mxu0 %vm563_vm1, %v562_v41  ;;  %452 = vmatprep.mubr.msk.f32.mxu1 %vm563_vm1, %v562_v41  ;;  %v160_v57 = vshrl.u32 %v157_v55, 7  ;;  %vm191_vm2 = vcmask 1041409   ;;  %v392_v29 = vld [vmem:[%s651_s2] ss:$0 sm:$0xff]  ;;  %p539_p5 = pnand %p538_p4, %p532_p1 }
  0x2f   :  { %101 = vadd.xlane.f32.xlu0 %v100_v24  ;;  %111 = vadd.xlane.f32.xlu1 %v110_v25  ;;  %vm193_vm3 = vcmask 1042434   ;;  %vm195_vm4 = vcmask 1043459   ;;  %vm197_vm5 = vcmask 1044484   ;;  %vm199_vm6 = vcmask 1045509   ;;  %v395_v34 = vld [vmem:[%s653_s4] ss:$0 sm:$0xff] }
  0x30   :  { %424 = vmatprep.subr.mxu1 %v562_v41  ;;  %v161_v60 = vsub.s32 %v158_v56, %v160_v57  ;;  %vm201_vm7 = vcmask 1046534   ;;  %vm203_vm8 = vcmask 1047559   ;;  %vm205_vm9 = vcmask 31744  }
  0x31   :  { %425 = vmatpush3.msra.mxu1 %v295_v44 }
  0x32   :  { %426 = vmatprep.subr.mxu1 %v562_v41 }
  0x33   :  { %116 = vadd.xlane.f32.xlu0 %v115_v32  ;;  %121 = vadd.xlane.f32.xlu1 %v120_v33 }
  0x34   :  { %427 = vmatpush3.msra.mxu1 %v294_v45 }
  0x35   :  { %428 = vmatprep.subr.mxu1 %v562_v41 }
  0x36   :  { %429 = vmatpush3.msra.mxu1 %v293_v46 }
  0x37   :  { %126 = vadd.xlane.f32.xlu0 %v125_v38  ;;  %131 = vadd.xlane.f32.xlu1 %v130_v39 }
  0x38   :  { %430 = vmatprep.subr.mxu1 %v562_v41 }
  0x39   :  { %431 = vmatpush3.msra.mxu1 %v292_v47 }
  0x3a   :  { %432 = vmatprep.subr.mxu1 %v562_v41 }
  0x3b   :  { %433 = vmatpush3.msra.mxu1 %v291_v48 }
  0x3c   :  { %434 = vmatprep.subr.mxu1 %v562_v41 }
  0x3d   :  { %435 = vmatpush3.msra.mxu1 %v290_v49 }
  0x3e   :  { %436 = vmatprep.subr.mxu1 %v562_v41 }
  0x3f   :  { %437 = vmatpush3.msra.mxu1 %v289_v50 }
  0x40   :  { %438 = vmatprep.subr.mxu1 %v562_v41 }
  0x41   :  { %439 = vmatpush3.msra.mxu1 %v288_v51 }
  0x42   :  { %440 = vmatprep.subr.mxu1 %v562_v41 }
  0x43   :  { %441 = vmatpush3.msra.mxu1 %v287_v52 }
  0x44   :  { %442 = vmatprep.subr.mxu1 %v562_v41 }
  0x45   :  { %443 = vmatpush3.msra.mxu1 %v286_v53 }
  0x46   :  { %444 = vmatprep.subr.mxu1 %v562_v41 }
  0x47   :  { %445 = vmatpush3.msra.mxu1 %v285_v54 }
  0x48   :  { %446 = vmatprep.subr.mxu1 %v562_v41 }
  0x49   :  { %447 = vmatpush3.msra.mxu1 %v284_v26 }
  0x4a   :  { %448 = vmatprep.subr.mxu1 %v562_v41 }
  0x4b   :  { %449 = vmatpush3.msra.mxu1 %v283_v27 }
  0x4c   :  { %450 = vmatprep.subr.mxu1 %v562_v41 }
  0x4d   :  { %451 = vmatpush3.msra.mxu1 %v282_v28 }
  0xb4   :  { %v97_v58 = vpop.xlane.xlu0 %96  ;;  %v107_v59 = vpop.xlane.xlu1 %106 }
  0xb5   :  { %v133_v61 = vmul.f32 0.00390625, %v97_v58  ;;  %v135_v62 = vmul.f32 0.00390625, %v107_v59 }
  0xb7   :  { %v162_v3 = vrot.slane %v133_v61, %v161_v60  ;;  %v170_v6 = vrot.slane %v135_v62, %v161_v60 }
  0xb8   :  { %v102_v63 = vpop.xlane.xlu0 %101  ;;  %v112_v0 = vpop.xlane.xlu1 %111 }
  0xb9   :  { %v134_v1 = vmul.f32 0.00390625, %v102_v63  ;;  %v136_v2 = vmul.f32 0.00390625, %v112_v0 }
  0xbb   :  { %v166_v4 = vrot.slane %v134_v1, %v161_v60  ;;  %v174_v5 = vrot.slane %v136_v2, %v161_v60 }
  0xbc   :  { %v117_v7 = vpop.xlane.xlu0 %116  ;;  %v122_v8 = vpop.xlane.xlu1 %121 }
  0xbd   :  { %v192_v9 = vsel %vm191_vm2, %v166_v4, %v162_v3  ;;  %v137_v10 = vmul.f32 0.00390625, %v117_v7  ;;  %v138_v11 = vmul.f32 0.00390625, %v122_v8 }
  0xbe   :  { %v194_v12 = vsel %vm193_vm3, %v170_v6, %v192_v9 }
  0xbf   :  { %v196_v13 = vsel %vm195_vm4, %v174_v5, %v194_v12  ;;  %v178_v14 = vrot.slane %v137_v10, %v161_v60  ;;  %v182_v15 = vrot.slane %v138_v11, %v161_v60 }
  0xc0   :  { %v127_v16 = vpop.xlane.xlu0 %126  ;;  %v132_v17 = vpop.xlane.xlu1 %131 }
  0xc1   :  { %v198_v18 = vsel %vm197_vm5, %v178_v14, %v196_v13  ;;  %v139_v19 = vmul.f32 0.00390625, %v127_v16  ;;  %v140_v20 = vmul.f32 0.00390625, %v132_v17 }
  0xc2   :  { %v200_v23 = vsel %vm199_vm6, %v182_v15, %v198_v18 }
  0xc3   :  { %v186_v21 = vrot.slane %v139_v19, %v161_v60  ;;  %v190_v22 = vrot.slane %v140_v20, %v161_v60 }
  0xc5   :  { %v202_v24 = vsel %vm201_vm7, %v186_v21, %v200_v23 }
  0xc6   :  { %v204_v25 = vsel %vm203_vm8, %v190_v22, %v202_v24 }
  0xc7   :  { %418 = vmatmul.mubr.msk.f32.vlgmr.msra.gmra.mxu0 %vm205_vm9, %v204_v25 }
 0x187   :  { %v277_v30 = vpop.f32.mrf.mxu0 }
 0x188   :  { %v278_v31 = vadd.f32 %v392_v29, %v277_v30 }
 0x189   :  { %v419_v32 = vpop.f32.mrf.mxu0 }
 0x18a   :  { %v281_v33 = vmax.f32 %v278_v31, 0.0 }
 0x18c   :  { %453 = vmatmul.mubr.f32.vlgmr.msra.gmra.mxu1 %v281_v33 }
 0x24c   :  { %v371_v35 = vpop.f32.mrf.mxu1 }
 0x24d   :  { %v372_v36 = vadd.f32 %v395_v34, %v371_v35 }
 0x24e   :  { %v454_v37 = vpop.f32.mrf.mxu1 }
 0x24f   :  { %375 = vst [vmem:[#allocation8] sm:$0xff] %v372_v36 }
 0x250   :  { %542 = shalt.err (!%p539_p5)
}
 0x251   :  { %385 = dma.vmem_to_hbm [thread:$0]  %s383_s12, 128, %s654_s5, [#allocation4]  }
 0x252   :  { %555 = dma.done.wait [#allocation4], 128  }
 0x253   :  { %556 = vsyncadd [#allocation4], 4294967168 }
 0x254   :  { %389 = vsyncpa [#allocation3], 1 }
 0x255   :  { %390 = vsyncpa [#allocation6], 1 }
 0x256   :  { %391 = vsyncpa [#allocation4], 1 }

</bundles_post_ra>
